<compile_context>
chip_gen: v6e
topology: v6e:2x2x1
jax: 0.10.0
libtpu: 0.0.40
codegen_flags: <defaults>
</compile_context>

<pallas_src>
import math
import jax
import jax.numpy as jnp
from jax.experimental import pallas as pl
from jax.experimental.pallas import tpu as pltpu

LANE = 128


def _round_up(x, m):
    return ((x + m - 1) // m) * m


def _critic_kernel(state_ref, action_ref,
                   w1s_ref, w1a_ref, b1_ref,
                   w2_ref, b2_ref,
                   w3_ref, b3_ref,
                   q_ref):
    # In-kernel .float() cast (no-op for f32 inputs).
    s = state_ref[...].astype(jnp.float32)
    a = action_ref[...].astype(jnp.float32)

    # Layer 1: fused concat via split matmul (two MXU passes into one f32 accumulator).
    h1 = (jnp.dot(s, w1s_ref[...], preferred_element_type=jnp.float32)
          + jnp.dot(a, w1a_ref[...], preferred_element_type=jnp.float32)
          + b1_ref[...])
    h1 = jnp.maximum(h1, 0.0)

    # Layer 2.
    h2 = jnp.dot(h1, w2_ref[...], preferred_element_type=jnp.float32) + b2_ref[...]
    h2 = jnp.maximum(h2, 0.0)

    # Layer 3: matmul stays 128-lane wide in-register; only the real n_output columns are
    # written back to HBM (avoids 128x padded write traffic).
    q = jnp.dot(h2, w3_ref[...], preferred_element_type=jnp.float32) + b3_ref[...]
    n_out = q_ref.shape[1]
    q_ref[...] = q[:, :n_out].astype(q_ref.dtype)


def _choose_tb(batch):
    """Batch tile: multiple of 8 sublanes, capped at 2048; >=2 grid steps when batch >= 16 so
    v7x's second TensorCore has work (harmless on v5e/v6e)."""
    if batch >= 16:
        tb = _round_up(-(-batch // 2), 8)   # ceil(batch/2) rounded up to 8
    else:
        tb = _round_up(batch, 8)
    return min(2048, tb)


def critic_forward(state, action, packed_params, n_output):
    """Replicates CriticNetwork.forward: cat -> h1+relu -> h2+relu -> h3 -> squeeze."""
    w1s, w1a, b1, w2, b2, w3, b3 = packed_params
    batch = state.shape[0]
    state_dim = state.shape[1]
    action_dim = action.shape[1]
    f_pad = w2.shape[0]
    out_pad = w3.shape[1]

    tb = _choose_tb(batch)
    grid = (pl.cdiv(batch, tb),)

    def act_spec(cols):
        return pl.BlockSpec((tb, cols), lambda i: (i, 0))

    def resident_spec(arr):
        # Constant index_map -> same block every grid step -> weights stay VMEM-resident.
        return pl.BlockSpec(arr.shape, lambda i: (0, 0))

    # Advisory cost estimate so XLA schedules around this (launch-overhead bound at small shapes).
    flops = 2 * batch * ((state_dim + action_dim) * f_pad + f_pad * f_pad + f_pad * out_pad)
    bytes_accessed = 4 * (batch * (state_dim + action_dim + n_output)
                          + (state_dim + action_dim) * f_pad + f_pad * f_pad + f_pad * out_pad
                          + 2 * f_pad + out_pad)
    cost = pl.CostEstimate(flops=flops, transcendentals=0, bytes_accessed=bytes_accessed)

    q = pl.pallas_call(
        _critic_kernel,
        out_shape=jax.ShapeDtypeStruct((batch, n_output), jnp.float32),
        grid=grid,
        in_specs=[
            act_spec(state_dim),
            act_spec(action_dim),
            resident_spec(w1s), resident_spec(w1a), resident_spec(b1),
            resident_spec(w2), resident_spec(b2),
            resident_spec(w3), resident_spec(b3),
        ],
        out_specs=pl.BlockSpec((tb, n_output), lambda i: (i, 0)),
        compiler_params=pltpu.CompilerParams(
            dimension_semantics=("parallel",)),   # megacore sharding on v7x
        cost_estimate=cost,
    )(state, action, w1s, w1a, b1, w2, b2, w3, b3)

    # Match torch.squeeze (removes all size-1 dims; batch==1 -> 0-D scalar, same as torch).
    return jnp.squeeze(q)


# ----------------------------- parameter construction -----------------------------

def _xavier_uniform(key, fan_in, fan_out, gain):
    # Matches torch.nn.init.xavier_uniform_ (on an (out, in) weight), returned already
    # transposed to (in, out) for the kernel's x @ W convention.
    bound = gain * math.sqrt(6.0 / (fan_in + fan_out))
    return jax.random.uniform(
        key, (fan_in, fan_out), dtype=jnp.float32, minval=-bound, maxval=bound
    )


def init_critic_params(key, n_input, n_features, n_output):
    """Logical (unpadded) parameters matching the PyTorch module."""
    k1, k2, k3, k4, k5, k6 = jax.random.split(key, 6)
    relu_gain = math.sqrt(2.0)  # nn.init.calculate_gain('relu')
    lin_gain = 1.0              # nn.init.calculate_gain('linear')

    w1 = _xavier_uniform(k1, n_input, n_features, relu_gain)
    w2 = _xavier_uniform(k2, n_features, n_features, relu_gain)
    w3 = _xavier_uniform(k3, n_features, n_output, lin_gain)

    # nn.Linear default bias init: U(-1/sqrt(fan_in), 1/sqrt(fan_in)); shape (1, out) for broadcast.
    def bias(k, fan_in, n_out):
        b = 1.0 / math.sqrt(fan_in)
        return jax.random.uniform(k, (1, n_out), dtype=jnp.float32, minval=-b, maxval=b)

    b1 = bias(k4, n_input, n_features)
    b2 = bias(k5, n_features, n_features)
    b3 = bias(k6, n_features, n_output)
    return (w1, b1, w2, b2, w3, b3)


def pack_critic_params(params, state_dim, action_dim, n_features, n_output, lane=LANE):
    """One-time repack: split W1 for the fused concat and zero-pad feature/output lanes to 128
    (matmul N-dims stay lane-dense; HBM output is NOT padded)."""
    w1, b1, w2, b2, w3, b3 = params
    f_pad = _round_up(n_features, lane)
    out_pad = _round_up(n_output, lane)

    def pad2(x, rows, cols):
        return jnp.zeros((rows, cols), x.dtype).at[: x.shape[0], : x.shape[1]].set(x)

    w1s = pad2(w1[:state_dim], state_dim, f_pad)
    w1a = pad2(w1[state_dim:], action_dim, f_pad)
    b1p = pad2(b1, 1, f_pad)
    w2p = pad2(w2, f_pad, f_pad)
    b2p = pad2(b2, 1, f_pad)
    w3p = pad2(w3, f_pad, out_pad)
    b3p = pad2(b3, 1, out_pad)
    return (w1s, w1a, b1p, w2p, b2p, w3p, b3p)


def _reference(state, action, params):
    w1, b1, w2, b2, w3, b3 = params
    sa = jnp.concatenate([state.astype(jnp.float32), action.astype(jnp.float32)], axis=1)
    h1 = jnp.maximum(sa @ w1 + b1, 0.0)
    h2 = jnp.maximum(h1 @ w2 + b2, 0.0)
    return jnp.squeeze(h2 @ w3 + b3)


if __name__ == "__main__":
    key = jax.random.PRNGKey(0)
    k_state, k_action, k_state2, k_action2, k_params = jax.random.split(key, 5)

    # Small shapes consistent with the module: state_dim + action_dim = n_input.
    state_dim = 10
    action_dim = 6
    n_input = state_dim + action_dim   # input_shape[-1] after concat
    n_features = 32
    n_output = 1                       # Q-value critic

    params = init_critic_params(k_params, n_input, n_features, n_output)
    packed = pack_critic_params(params, state_dim, action_dim, n_features, n_output)

    # Test 1: tiny batch (single grid step).
    batch = 8
    state = jax.random.normal(k_state, (batch, state_dim), dtype=jnp.float32)
    action = jax.random.normal(k_action, (batch, action_dim), dtype=jnp.float32)
    q = jax.block_until_ready(critic_forward(state, action, packed, n_output))
    q_ref = _reference(state, action, params)
    assert q.shape == q_ref.shape, (q.shape, q_ref.shape)
    assert jnp.allclose(q, q_ref, atol=1e-5, rtol=1e-5)

    # Test 2: ragged batch (>= 2 grid steps, exercises megacore split + partial last tile).
    batch2 = 300
    state2 = jax.random.normal(k_state2, (batch2, state_dim), dtype=jnp.float32)
    action2 = jax.random.normal(k_action2, (batch2, action_dim), dtype=jnp.float32)
    q2 = jax.block_until_ready(critic_forward(state2, action2, packed, n_output))
    q2_ref = _reference(state2, action2, params)
    assert q2.shape == q2_ref.shape, (q2.shape, q2_ref.shape)
    assert jnp.allclose(q2, q2_ref, atol=1e-5, rtol=1e-5)

    print("KERNEL_OK")
</pallas_src>

<mosaic_0001>
module attributes {stable_mosaic.version = 11 : i64} {
  func.func @_critic_kernel(%arg0: i32, %arg1: memref<8x10xf32, #tpu.memory_space<vmem>>, %arg2: memref<8x6xf32, #tpu.memory_space<vmem>>, %arg3: memref<10x128xf32, #tpu.memory_space<vmem>>, %arg4: memref<6x128xf32, #tpu.memory_space<vmem>>, %arg5: memref<1x128xf32, #tpu.memory_space<vmem>>, %arg6: memref<128x128xf32, #tpu.memory_space<vmem>>, %arg7: memref<1x128xf32, #tpu.memory_space<vmem>>, %arg8: memref<128x128xf32, #tpu.memory_space<vmem>>, %arg9: memref<1x128xf32, #tpu.memory_space<vmem>>, %arg10: memref<8x1xf32, #tpu.memory_space<vmem>>) attributes {dimension_semantics = [#tpu.dimension_semantics<parallel>], iteration_bounds = array<i64: 1>, scalar_prefetch = 0 : i64, scratch_operands = 0 : i64, tpu.core_type = #tpu.core_type<tc>, window_params = [{transform_indices = @transform_0, window_bounds = array<i64: 8, 10>}, {transform_indices = @transform_1, window_bounds = array<i64: 8, 6>}, {pipeline_mode = #tpu.pipeline_mode<synchronous>, transform_indices = @transform_2, window_bounds = array<i64: 10, 128>}, {pipeline_mode = #tpu.pipeline_mode<synchronous>, transform_indices = @transform_3, window_bounds = array<i64: 6, 128>}, {pipeline_mode = #tpu.pipeline_mode<synchronous>, transform_indices = @transform_4, window_bounds = array<i64: 1, 128>}, {pipeline_mode = #tpu.pipeline_mode<synchronous>, transform_indices = @transform_5, window_bounds = array<i64: 128, 128>}, {pipeline_mode = #tpu.pipeline_mode<synchronous>, transform_indices = @transform_6, window_bounds = array<i64: 1, 128>}, {pipeline_mode = #tpu.pipeline_mode<synchronous>, transform_indices = @transform_7, window_bounds = array<i64: 128, 128>}, {pipeline_mode = #tpu.pipeline_mode<synchronous>, transform_indices = @transform_8, window_bounds = array<i64: 1, 128>}, {transform_indices = @transform_9, window_bounds = array<i64: 8, 1>}]} {
    %c0 = arith.constant 0 : index
    %c0_0 = arith.constant 0 : index
    %0 = vector.load %arg1[%c0, %c0_0] : memref<8x10xf32, #tpu.memory_space<vmem>>, vector<8x10xf32>
    %c0_1 = arith.constant 0 : index
    %c0_2 = arith.constant 0 : index
    %1 = vector.load %arg2[%c0_1, %c0_2] : memref<8x6xf32, #tpu.memory_space<vmem>>, vector<8x6xf32>
    %c0_3 = arith.constant 0 : index
    %c0_4 = arith.constant 0 : index
    %2 = vector.load %arg3[%c0_3, %c0_4] : memref<10x128xf32, #tpu.memory_space<vmem>>, vector<10x128xf32>
    %cst = arith.constant dense<0.000000e+00> : vector<8x128xf32>
    %3 = tpu.matmul %0, %2, %cst {dimension_numbers = #tpu.dot_dimension_numbers<[1], [0], [0], [1], [0, 0, 1, 1], [], []>} : vector<8x10xf32>, vector<10x128xf32>, vector<8x128xf32> -> vector<8x128xf32>
    %c0_5 = arith.constant 0 : index
    %c0_6 = arith.constant 0 : index
    %4 = vector.load %arg4[%c0_5, %c0_6] : memref<6x128xf32, #tpu.memory_space<vmem>>, vector<6x128xf32>
    %cst_7 = arith.constant dense<0.000000e+00> : vector<8x128xf32>
    %5 = tpu.matmul %1, %4, %cst_7 {dimension_numbers = #tpu.dot_dimension_numbers<[1], [0], [0], [1], [0, 0, 1, 1], [], []>} : vector<8x6xf32>, vector<6x128xf32>, vector<8x128xf32> -> vector<8x128xf32>
    %6 = arith.addf %3, %5 : vector<8x128xf32>
    %c0_8 = arith.constant 0 : index
    %c0_9 = arith.constant 0 : index
    %7 = vector.load %arg5[%c0_8, %c0_9] : memref<1x128xf32, #tpu.memory_space<vmem>>, vector<1x128xf32>
    %8 = vector.broadcast %7 : vector<1x128xf32> to vector<8x128xf32>
    %9 = arith.addf %6, %8 : vector<8x128xf32>
    %cst_10 = arith.constant 0.000000e+00 : f32
    %10 = vector.broadcast %cst_10 : f32 to vector<8x128xf32>
    %11 = arith.maximumf %9, %10 : vector<8x128xf32>
    %c0_11 = arith.constant 0 : index
    %c0_12 = arith.constant 0 : index
    %12 = vector.load %arg6[%c0_11, %c0_12] : memref<128x128xf32, #tpu.memory_space<vmem>>, vector<128x128xf32>
    %cst_13 = arith.constant dense<0.000000e+00> : vector<8x128xf32>
    %13 = tpu.matmul %11, %12, %cst_13 {dimension_numbers = #tpu.dot_dimension_numbers<[1], [0], [0], [1], [0, 0, 1, 1], [], []>} : vector<8x128xf32>, vector<128x128xf32>, vector<8x128xf32> -> vector<8x128xf32>
    %c0_14 = arith.constant 0 : index
    %c0_15 = arith.constant 0 : index
    %14 = vector.load %arg7[%c0_14, %c0_15] : memref<1x128xf32, #tpu.memory_space<vmem>>, vector<1x128xf32>
    %15 = vector.broadcast %14 : vector<1x128xf32> to vector<8x128xf32>
    %16 = arith.addf %13, %15 : vector<8x128xf32>
    %cst_16 = arith.constant 0.000000e+00 : f32
    %17 = vector.broadcast %cst_16 : f32 to vector<8x128xf32>
    %18 = arith.maximumf %16, %17 : vector<8x128xf32>
    %c0_17 = arith.constant 0 : index
    %c0_18 = arith.constant 0 : index
    %19 = vector.load %arg8[%c0_17, %c0_18] : memref<128x128xf32, #tpu.memory_space<vmem>>, vector<128x128xf32>
    %cst_19 = arith.constant dense<0.000000e+00> : vector<8x128xf32>
    %20 = tpu.matmul %18, %19, %cst_19 {dimension_numbers = #tpu.dot_dimension_numbers<[1], [0], [0], [1], [0, 0, 1, 1], [], []>} : vector<8x128xf32>, vector<128x128xf32>, vector<8x128xf32> -> vector<8x128xf32>
    %c0_20 = arith.constant 0 : index
    %c0_21 = arith.constant 0 : index
    %21 = vector.load %arg9[%c0_20, %c0_21] : memref<1x128xf32, #tpu.memory_space<vmem>>, vector<1x128xf32>
    %22 = vector.broadcast %21 : vector<1x128xf32> to vector<8x128xf32>
    %23 = arith.addf %20, %22 : vector<8x128xf32>
    %24 = vector.extract_strided_slice %23 {offsets = [0, 0], sizes = [8, 1], strides = [1, 1]} : vector<8x128xf32> to vector<8x1xf32>
    %c0_22 = arith.constant 0 : index
    %c0_23 = arith.constant 0 : index
    %25 = vector.load %arg10[%c0_22, %c0_23] : memref<8x1xf32, #tpu.memory_space<vmem>>, vector<8x1xf32>
    tpu.vector_store %arg10[%c0_22, %c0_23], %24 {strides = array<i32>} : memref<8x1xf32, #tpu.memory_space<vmem>>, vector<8x1xf32>,
    return
  }
  func.func @transform_0(%arg0: i32) -> (i32, i32) {
    %c0_i32 = arith.constant 0 : i32
    %c0_i32_0 = arith.constant 0 : i32
    return %arg0, %c0_i32 : i32, i32
  }
  func.func @transform_1(%arg0: i32) -> (i32, i32) {
    %c0_i32 = arith.constant 0 : i32
    %c0_i32_0 = arith.constant 0 : i32
    return %arg0, %c0_i32 : i32, i32
  }
  func.func @transform_2(%arg0: i32) -> (i32, i32) {
    %c0_i32 = arith.constant 0 : i32
    %c0_i32_0 = arith.constant 0 : i32
    %c0_i32_1 = arith.constant 0 : i32
    return %c0_i32, %c0_i32_0 : i32, i32
  }
  func.func @transform_3(%arg0: i32) -> (i32, i32) {
    %c0_i32 = arith.constant 0 : i32
    %c0_i32_0 = arith.constant 0 : i32
    %c0_i32_1 = arith.constant 0 : i32
    return %c0_i32, %c0_i32_0 : i32, i32
  }
  func.func @transform_4(%arg0: i32) -> (i32, i32) {
    %c0_i32 = arith.constant 0 : i32
    %c0_i32_0 = arith.constant 0 : i32
    %c0_i32_1 = arith.constant 0 : i32
    return %c0_i32, %c0_i32_0 : i32, i32
  }
  func.func @transform_5(%arg0: i32) -> (i32, i32) {
    %c0_i32 = arith.constant 0 : i32
    %c0_i32_0 = arith.constant 0 : i32
    %c0_i32_1 = arith.constant 0 : i32
    return %c0_i32, %c0_i32_0 : i32, i32
  }
  func.func @transform_6(%arg0: i32) -> (i32, i32) {
    %c0_i32 = arith.constant 0 : i32
    %c0_i32_0 = arith.constant 0 : i32
    %c0_i32_1 = arith.constant 0 : i32
    return %c0_i32, %c0_i32_0 : i32, i32
  }
  func.func @transform_7(%arg0: i32) -> (i32, i32) {
    %c0_i32 = arith.constant 0 : i32
    %c0_i32_0 = arith.constant 0 : i32
    %c0_i32_1 = arith.constant 0 : i32
    return %c0_i32, %c0_i32_0 : i32, i32
  }
  func.func @transform_8(%arg0: i32) -> (i32, i32) {
    %c0_i32 = arith.constant 0 : i32
    %c0_i32_0 = arith.constant 0 : i32
    %c0_i32_1 = arith.constant 0 : i32
    return %c0_i32, %c0_i32_0 : i32, i32
  }
  func.func @transform_9(%arg0: i32) -> (i32, i32) {
    %c0_i32 = arith.constant 0 : i32
    %c0_i32_0 = arith.constant 0 : i32
    return %arg0, %c0_i32 : i32, i32
  }
}

</mosaic_0001>

<bundles_post_ra>
// kernel: tpu_custom_call.1
= control target key start
LH: loop header
LB: loop body
LE: loop exit
PB: predicated region body
PF: predicated region fallthrough
CT: control target
= control target key end

     0   :  { %14 = vsyncpa [#allocation3], 0  ;;  %s874_s0 = inlined_call_operand.hbm [shape: f32[8,10], index: 0, kind: input, shape index: {}]   ;;  %s875_s1 = inlined_call_operand.hbm [shape: f32[8,6], index: 1, kind: input, shape index: {}]   ;;  %s876_s2 = inlined_call_operand.hbm [shape: f32[10,128], index: 2, kind: input, shape index: {}]   ;;  %s877_s3 = inlined_call_operand.hbm [shape: f32[6,128], index: 3, kind: input, shape index: {}]   ;;  %s878_s4 = inlined_call_operand.vmem [shape: f32[1,128], index: 4, kind: input, shape index: {}]   ;;  %s879_s5 = inlined_call_operand.hbm [shape: f32[128,128], index: 5, kind: input, shape index: {}]   ;;  %s880_s6 = inlined_call_operand.vmem [shape: f32[1,128], index: 6, kind: input, shape index: {}]   ;;  %s881_s7 = inlined_call_operand.hbm [shape: f32[128,128], index: 7, kind: input, shape index: {}]   ;;  %s882_s8 = inlined_call_operand.vmem [shape: f32[1,128], index: 8, kind: input, shape index: {}]   ;;  %s883_s9 = inlined_call_operand.vmem [shape: f32[8,1], index: 9, kind: output, shape index: {}]  }
   0x1   :  { %15 = vsyncpa [#allocation5], 0 }
   0x2   :  { %16 = vsyncpa [#allocation8], 0 }
   0x3   :  { %17 = vsyncpa [#allocation11], 0  ;;  %s741_s30 = smov [#allocation4]   ;;  %s742_s11 = smov [#allocation7]  }
   0x4   :  { %s34_s10 = sshll.u32 %s741_s30, 4  ;;  %s56_s12 = sshll.u32 %s742_s11, 4  ;;  %s35_s10 = int_to_ptr.vmem [resolvable:$true] %s34_s10  ;;  %s57_s12 = int_to_ptr.vmem [resolvable:$true] %s56_s12 }
   0x5   :  { %s621_s13 = scalar_lea.vmem %s35_s10, 128  ;;  %p626_p1 = scmp.lt.s32.totalorder %s35_s10, %s35_s10 }
   0x6   :  { %p622_p0 = scmp.ne.s32.totalorder %s35_s10, %s621_s13  ;;  %p627_p2 = scmp.lt.s32.totalorder %s621_s13, %s621_s13 }
   0x8   :  { %p628_p3 = por %p627_p2, %p626_p1 }
   0xa   :  { %p629_p4 = pnand %p628_p3, %p622_p0 }
   0xc   :  { %632 = shalt.err (!%p629_p4)
}
   0xd   :  { %37 = dma.hbm_to_vmem [thread:$0]  %s875_s1, 128, %s35_s10, [#allocation5]  }
   0xe   :  { %s641_s16 = scalar_lea.vmem %s57_s12, 128  ;;  %p646_p6 = scmp.lt.s32.totalorder %s57_s12, %s57_s12 }
   0xf   :  { %p642_p5 = scmp.ne.s32.totalorder %s57_s12, %s641_s16  ;;  %p647_p7 = scmp.lt.s32.totalorder %s641_s16, %s641_s16 }
  0x11   :  { %p648_p8 = por %p647_p7, %p646_p6 }
  0x13   :  { %p649_p9 = pnand %p648_p8, %p642_p5 }
  0x15   :  { %652 = shalt.err (!%p649_p9)
}
  0x16   :  { %59 = dma.hbm_to_vmem [thread:$0]  %s877_s3, 128, %s57_s12, [#allocation8]  }
  0x17   :  { %s743_s19 = smov [#allocation2]   ;;  %s744_s21 = smov [#allocation6]  }
  0x18   :  { %s24_s20 = sshll.u32 %s743_s19, 4  ;;  %s43_s22 = sshll.u32 %s744_s21, 4  ;;  %s25_s20 = int_to_ptr.vmem [resolvable:$true] %s24_s20  ;;  %s44_s22 = int_to_ptr.vmem [resolvable:$true] %s43_s22 }
  0x19   :  { %s661_s23 = scalar_lea.vmem %s25_s20, 128  ;;  %p666_p11 = scmp.lt.s32.totalorder %s25_s20, %s25_s20 }
  0x1a   :  { %p662_p10 = scmp.ne.s32.totalorder %s25_s20, %s661_s23  ;;  %p667_p12 = scmp.lt.s32.totalorder %s661_s23, %s661_s23 }
  0x1c   :  { %p668_p13 = por %p667_p12, %p666_p11 }
  0x1e   :  { %p669_p0 = pnand %p668_p13, %p662_p10 }
  0x20   :  { %672 = shalt.err (!%p669_p0)
}
  0x21   :  { %27 = dma.hbm_to_vmem [thread:$0]  %s874_s0, 128, %s25_s20, [#allocation3]  }
  0x22   :  { %s681_s25 = scalar_lea.vmem %s44_s22, 256  ;;  %p686_p2 = scmp.lt.s32.totalorder %s44_s22, %s44_s22 }
  0x23   :  { %p682_p1 = scmp.ne.s32.totalorder %s44_s22, %s681_s25  ;;  %p687_p3 = scmp.lt.s32.totalorder %s681_s25, %s681_s25 }
  0x25   :  { %p688_p4 = por %p687_p3, %p686_p2 }
  0x27   :  { %p689_p5 = pnand %p688_p4, %p682_p1 }
  0x29   :  { %692 = shalt.err (!%p689_p5)
}
  0x2a   :  { %s745_s3 = smov 128   ;;  %s746_s26 = smov 8  }
  0x2b   :  { %49 = dma.hbm_to_vmem [thread:$0]  %s876_s2, 256, %s44_s22, [#allocation5], %s745_s3, %s745_s3, %s746_s26  }
  0x2c   :  { %s747_s29 = smov [#allocation9]   ;;  %s748_s10 = smov [#allocation10]  }
  0x2d   :  { %s67_s30 = sshll.u32 %s747_s29, 4  ;;  %s81_s11 = sshll.u32 %s748_s10, 4  ;;  %s68_s30 = int_to_ptr.vmem [resolvable:$true] %s67_s30  ;;  %s82_s11 = int_to_ptr.vmem [resolvable:$true] %s81_s11 }
  0x2e   :  { %s701_s0 = scalar_lea.vmem %s68_s30, 2048  ;;  %p706_p7 = scmp.lt.s32.totalorder %s68_s30, %s68_s30 }
  0x2f   :  { %p702_p6 = scmp.ne.s32.totalorder %s68_s30, %s701_s0  ;;  %p707_p8 = scmp.lt.s32.totalorder %s701_s0, %s701_s0 }
  0x31   :  { %p708_p9 = por %p707_p8, %p706_p7 }
  0x33   :  { %p709_p10 = pnand %p708_p9, %p702_p6 }
  0x35   :  { %712 = shalt.err (!%p709_p10)
}
  0x36   :  { %73 = dma.hbm_to_vmem [thread:$0]  %s879_s5, 2048, %s68_s30, [#allocation8], %s745_s3, %s745_s3, %s746_s26  }
  0x37   :  { %s721_s14 = scalar_lea.vmem %s82_s11, 2048  ;;  %p726_p12 = scmp.lt.s32.totalorder %s82_s11, %s82_s11 }
  0x38   :  { %p722_p11 = scmp.ne.s32.totalorder %s82_s11, %s721_s14  ;;  %p727_p13 = scmp.lt.s32.totalorder %s721_s14, %s721_s14 }
  0x3a   :  { %p728_p0 = por %p727_p13, %p726_p12 }
  0x3c   :  { %p729_p1 = pnand %p728_p0, %p722_p11 }
  0x3e   :  { %732 = shalt.err (!%p729_p1)
}
  0x3f   :  { %87 = dma.hbm_to_vmem [thread:$0]  %s881_s7, 2048, %s82_s11, [#allocation11], %s745_s3, %s745_s3, %s746_s26  }
  0x40   :  { %733 = dma.done.wait [#allocation3], 128  }
  0x41   :  { %734 = vsyncadd [#allocation3], 4294967168 }
  0x42   :  { %735 = dma.done.wait [#allocation5], 384  }
  0x43   :  { %736 = vsyncadd [#allocation5], 4294966912 }
  0x44   :  { %737 = dma.done.wait [#allocation8], 2176  }
  0x45   :  { %738 = vsyncadd [#allocation8], 4294965120 }
  0x46   :  { %739 = dma.done.wait [#allocation11], 2048  }
  0x47   :  { %740 = vsyncadd [#allocation11], 4294965248  ;;  %v749_v0 = vmov 0.0   ;;  %vm750_vm0 = vmmov 0   ;;  %vm117_vm1 = vcmask 1045504   ;;  %vm195_vm2 = vcmask 1041408  }
  0x48   :  { %521 = vmatprep.subr.mxu0 %v749_v0  ;;  %526 = vmatprep.subr.mxu1 %v749_v0  ;;  %vm113_vm3 = vcmask 48128   ;;  %v112_v1 = vld [vmem:[#allocation7] sm:$0x3f]  ;;  %v111_v2 = vld [vmem:[#allocation6 + $0x8] sm:$0x3]  ;;  %v109_v3 = vld [vmem:[#allocation4] sm:$0xff] }
  0x49   :  { %523 = vmatprep.mubr.msk.f32.mxu0 %vm750_vm0, %v749_v0  ;;  %530 = vmatprep.mubr.msk.f32.mxu1 %vm750_vm0, %v749_v0  ;;  %v110_v4 = vld [vmem:[#allocation6] sm:$0xff]  ;;  %v108_v5 = vld [vmem:[#allocation2] sm:$0xff]  ;;  %vm191_vm4 = vcmask 80896   ;;  %v292_v7 = vld [vmem:[#allocation9 + $0x70] sm:$0xff]  ;;  %vm465_vm5 = vcmask 7168  }
  0x4a   :  { %522 = vmatpush3.msk.msra.mxu0 %vm117_vm1, %v112_v1  ;;  %527 = vmatpush3.msk.msra.mxu1 %vm195_vm2, %v111_v2  ;;  %v293_v6 = vld [vmem:[#allocation9 + $0x78] sm:$0xff]  ;;  %v291_v8 = vld [vmem:[#allocation9 + $0x68] sm:$0xff]  ;;  %v290_v9 = vld [vmem:[#allocation9 + $0x60] sm:$0xff] }
  0x4b   :  { %524 = vmatmul.mubr.msk.f32.vlgmr.msra.gmra.mxu0 %vm113_vm3, %v109_v3  ;;  %528 = vmatprep.subr.mxu1 %v749_v0  ;;  %v289_v10 = vld [vmem:[#allocation9 + $0x58] sm:$0xff]  ;;  %v288_v11 = vld [vmem:[#allocation9 + $0x50] sm:$0xff]  ;;  %v287_v12 = vld [vmem:[#allocation9 + $0x48] sm:$0xff] }
  0x4c   :  { %529 = vmatpush3.msra.mxu1 %v110_v4  ;;  %533 = vmatprep.subr.mxu0 %v749_v0  ;;  %v286_v13 = vld [vmem:[#allocation9 + $0x40] sm:$0xff]  ;;  %v285_v14 = vld [vmem:[#allocation9 + $0x38] sm:$0xff]  ;;  %v284_v15 = vld [vmem:[#allocation9 + $0x30] sm:$0xff] }
  0x4d   :  { %531 = vmatmul.mubr.msk.f32.vlgmr.msra.gmra.mxu1 %vm191_vm4, %v108_v5  ;;  %534 = vmatpush3.msra.mxu0 %v293_v6  ;;  %v283_v16 = vld [vmem:[#allocation9 + $0x28] sm:$0xff]  ;;  %v282_v17 = vld [vmem:[#allocation9 + $0x20] sm:$0xff]  ;;  %v281_v18 = vld [vmem:[#allocation9 + $0x18] sm:$0xff] }
  0x4e   :  { %535 = vmatprep.subr.mxu0 %v749_v0  ;;  %565 = vmatprep.mubr.msk.f32.mxu0 %vm750_vm0, %v749_v0  ;;  %v280_v19 = vld [vmem:[#allocation9 + $0x10] sm:$0xff]  ;;  %v279_v20 = vld [vmem:[#allocation9 + $0x8] sm:$0xff]  ;;  %v278_v21 = vld [vmem:[#allocation9] sm:$0xff] }
  0x4f   :  { %536 = vmatpush3.msra.mxu0 %v292_v7  ;;  %568 = vmatprep.subr.mxu1 %v749_v0  ;;  %v387_v22 = vld [vmem:[#allocation10 + $0x78] sm:$0xff]  ;;  %v386_v23 = vld [vmem:[#allocation10 + $0x70] sm:$0xff]  ;;  %v385_v24 = vld [vmem:[#allocation10 + $0x68] sm:$0xff] }
  0x50   :  { %537 = vmatprep.subr.mxu0 %v749_v0  ;;  %600 = vmatprep.mubr.msk.f32.mxu1 %vm750_vm0, %v749_v0  ;;  %v384_v25 = vld [vmem:[#allocation10 + $0x60] sm:$0xff]  ;;  %v383_v26 = vld [vmem:[#allocation10 + $0x58] sm:$0xff]  ;;  %v382_v27 = vld [vmem:[#allocation10 + $0x50] sm:$0xff] }
  0x51   :  { %538 = vmatpush3.msra.mxu0 %v291_v8  ;;  %569 = vmatpush3.msra.mxu1 %v387_v22  ;;  %v381_v28 = vld [vmem:[#allocation10 + $0x48] sm:$0xff]  ;;  %v380_v29 = vld [vmem:[#allocation10 + $0x40] sm:$0xff]  ;;  %v379_v30 = vld [vmem:[#allocation10 + $0x38] sm:$0xff] }
  0x52   :  { %539 = vmatprep.subr.mxu0 %v749_v0  ;;  %570 = vmatprep.subr.mxu1 %v749_v0  ;;  %v378_v31 = vld [vmem:[#allocation10 + $0x30] sm:$0xff]  ;;  %v377_v32 = vld [vmem:[#allocation10 + $0x28] sm:$0xff]  ;;  %v376_v33 = vld [vmem:[#allocation10 + $0x20] sm:$0xff] }
  0x53   :  { %540 = vmatpush3.msra.mxu0 %v290_v9  ;;  %571 = vmatpush3.msra.mxu1 %v386_v23  ;;  %v375_v34 = vld [vmem:[#allocation10 + $0x18] sm:$0xff]  ;;  %v374_v43 = vld [vmem:[#allocation10 + $0x10] sm:$0xff]  ;;  %v373_v44 = vld [vmem:[#allocation10 + $0x8] sm:$0xff] }
  0x54   :  { %541 = vmatprep.subr.mxu0 %v749_v0  ;;  %572 = vmatprep.subr.mxu1 %v749_v0  ;;  %v479_v38 = vld [vmem:[%s878_s4] ss:$0 sm:$0xff]  ;;  %v372_v45 = vld [vmem:[#allocation10] sm:$0xff] }
  0x55   :  { %542 = vmatpush3.msra.mxu0 %v289_v10  ;;  %573 = vmatpush3.msra.mxu1 %v385_v24  ;;  %v480_v46 = vld [vmem:[%s880_s6] ss:$0 sm:$0xff] }
  0x56   :  { %543 = vmatprep.subr.mxu0 %v749_v0  ;;  %574 = vmatprep.subr.mxu1 %v749_v0  ;;  %v481_v51 = vld [vmem:[%s882_s8] ss:$0 sm:$0xff] }
  0x57   :  { %544 = vmatpush3.msra.mxu0 %v288_v11  ;;  %575 = vmatpush3.msra.mxu1 %v384_v25 }
  0x58   :  { %545 = vmatprep.subr.mxu0 %v749_v0  ;;  %576 = vmatprep.subr.mxu1 %v749_v0 }
  0x59   :  { %546 = vmatpush3.msra.mxu0 %v287_v12  ;;  %577 = vmatpush3.msra.mxu1 %v383_v26 }
  0x5a   :  { %547 = vmatprep.subr.mxu0 %v749_v0  ;;  %578 = vmatprep.subr.mxu1 %v749_v0 }
  0x5b   :  { %548 = vmatpush3.msra.mxu0 %v286_v13  ;;  %579 = vmatpush3.msra.mxu1 %v382_v27 }
  0x5c   :  { %549 = vmatprep.subr.mxu0 %v749_v0  ;;  %580 = vmatprep.subr.mxu1 %v749_v0 }
  0x5d   :  { %550 = vmatpush3.msra.mxu0 %v285_v14  ;;  %581 = vmatpush3.msra.mxu1 %v381_v28 }
  0x5e   :  { %551 = vmatprep.subr.mxu0 %v749_v0  ;;  %582 = vmatprep.subr.mxu1 %v749_v0 }
  0x5f   :  { %552 = vmatpush3.msra.mxu0 %v284_v15  ;;  %583 = vmatpush3.msra.mxu1 %v380_v29 }
  0x60   :  { %553 = vmatprep.subr.mxu0 %v749_v0  ;;  %584 = vmatprep.subr.mxu1 %v749_v0 }
  0x61   :  { %554 = vmatpush3.msra.mxu0 %v283_v16  ;;  %585 = vmatpush3.msra.mxu1 %v379_v30 }
  0x62   :  { %555 = vmatprep.subr.mxu0 %v749_v0  ;;  %586 = vmatprep.subr.mxu1 %v749_v0 }
  0x63   :  { %556 = vmatpush3.msra.mxu0 %v282_v17  ;;  %587 = vmatpush3.msra.mxu1 %v378_v31 }
  0x64   :  { %557 = vmatprep.subr.mxu0 %v749_v0  ;;  %588 = vmatprep.subr.mxu1 %v749_v0 }
  0x65   :  { %558 = vmatpush3.msra.mxu0 %v281_v18  ;;  %589 = vmatpush3.msra.mxu1 %v377_v32 }
  0x66   :  { %559 = vmatprep.subr.mxu0 %v749_v0  ;;  %590 = vmatprep.subr.mxu1 %v749_v0 }
  0x67   :  { %560 = vmatpush3.msra.mxu0 %v280_v19  ;;  %591 = vmatpush3.msra.mxu1 %v376_v33 }
  0x68   :  { %561 = vmatprep.subr.mxu0 %v749_v0  ;;  %592 = vmatprep.subr.mxu1 %v749_v0 }
  0x69   :  { %562 = vmatpush3.msra.mxu0 %v279_v20  ;;  %593 = vmatpush3.msra.mxu1 %v375_v34 }
  0x6a   :  { %563 = vmatprep.subr.mxu0 %v749_v0  ;;  %594 = vmatprep.subr.mxu1 %v749_v0 }
  0x6b   :  { %564 = vmatpush3.msra.mxu0 %v278_v21  ;;  %595 = vmatpush3.msra.mxu1 %v374_v43 }
  0x6c   :  { %596 = vmatprep.subr.mxu1 %v749_v0 }
  0x6d   :  { %597 = vmatpush3.msra.mxu1 %v373_v44 }
  0x6e   :  { %598 = vmatprep.subr.mxu1 %v749_v0 }
  0x6f   :  { %599 = vmatpush3.msra.mxu1 %v372_v45 }
 0x10b   :  { %v187_v35 = vpop.f32.mrf.mxu0 }
 0x10d   :  { %v525_v36 = vpop.f32.mrf.mxu0  ;;  %v265_v37 = vpop.f32.mrf.mxu1 }
 0x10e   :  { %v266_v39 = vadd.f32 %v265_v37, %v187_v35 }
 0x10f   :  { %v532_v40 = vpop.f32.mrf.mxu1 }
 0x110   :  { %v276_v41 = vadd.f32 %v479_v38, %v266_v39 }
 0x112   :  { %v277_v42 = vmax.f32 %v276_v41, 0.0 }
 0x114   :  { %566 = vmatmul.mubr.f32.vlgmr.msra.gmra.mxu0 %v277_v42 }
 0x1d4   :  { %v367_v47 = vpop.f32.mrf.mxu0 }
 0x1d5   :  { %v368_v48 = vadd.f32 %v480_v46, %v367_v47 }
 0x1d6   :  { %v567_v49 = vpop.f32.mrf.mxu0 }
 0x1d7   :  { %v371_v50 = vmax.f32 %v368_v48, 0.0 }
 0x1d9   :  { %601 = vmatmul.mubr.f32.vlgmr.msra.gmra.mxu1 %v371_v50 }
 0x299   :  { %v461_v52 = vpop.f32.mrf.mxu1 }
 0x29a   :  { %v462_v53 = vadd.f32 %v481_v51, %v461_v52 }
 0x29b   :  { %v602_v54 = vpop.f32.mrf.mxu1 }
 0x29c   :  { %466 = vst.msk [vmem:[%s883_s9] sm:$0xff] %vm465_vm5, %v462_v53 }
 0x29d   :  { %471 = vsyncpa [#allocation3], 1 }
 0x29e   :  { %472 = vsyncpa [#allocation5], 1 }
 0x29f   :  { %473 = vsyncpa [#allocation8], 1 }
 0x2a0   :  { %474 = vsyncpa [#allocation11], 1 }

</bundles_post_ra>
